<compile_context>
chip_gen: v5e
topology: v5e:2x2
jax: 0.10.0
libtpu: 0.0.40
codegen_flags: <defaults>
</compile_context>

<pallas_src>
import functools

import jax
import jax.numpy as jnp
from jax.experimental import pallas as pl
from jax.experimental.pallas import tpu as pltpu


def _ce2d_kernel(ignore_label, hw, tile_pix,
                 w_ref, logits_ref, tgt_ref, sum_ref, den_ref):
    """One (batch, pixel-tile) step: accumulate per-lane weighted CE and weights."""
    p = pl.program_id(1)

    @pl.when(p == 0)
    def _():
        sum_ref[...] = jnp.zeros_like(sum_ref)
        den_ref[...] = jnp.zeros_like(den_ref)

    logits = logits_ref[...].astype(jnp.float32)          # (C, TILE_PIX)
    t = tgt_ref[...]                                      # (1, TILE_PIX) int32

    # Ragged-tail mask: the last tile of the pixel axis may extend past H*W.
    pix = p * tile_pix + jax.lax.broadcasted_iota(jnp.int32, t.shape, 1)
    in_range = pix < hw                                   # (1, TILE_PIX)

    valid = jnp.logical_and(in_range,
                            jnp.logical_and(t >= 0, t != ignore_label))
    safe_t = jnp.where(valid, t, 0)                       # (1, TILE_PIX)

    cls = jax.lax.broadcasted_iota(jnp.int32, logits.shape, 0)   # (C, TILE_PIX)
    onehot = cls == safe_t                                        # (C, TILE_PIX)

    # Numerically-stable log-sum-exp over the class (sublane) axis.
    m = jnp.max(logits, axis=0, keepdims=True)                    # (1, TILE_PIX)
    lse = m + jnp.log(jnp.sum(jnp.exp(logits - m), axis=0, keepdims=True))
    tgt_logit = jnp.sum(jnp.where(onehot, logits, 0.0), axis=0, keepdims=True)

    w = jnp.broadcast_to(w_ref[...].astype(jnp.float32), logits.shape)  # (C, TILE_PIX)
    w_row = jnp.sum(jnp.where(onehot, w, 0.0), axis=0, keepdims=True)   # (1, TILE_PIX)

    # select AFTER the (finite-weight) multiply; the unselected branch cannot
    # propagate NaN/inf from padded-tail garbage through the select.
    sum_ref[...] += jnp.where(valid, (lse - tgt_logit) * w_row, 0.0)
    den_ref[...] += jnp.where(valid, w_row, 0.0)


def cross_entropy_2d(predict, target, weight=None, size_average=True,
                     ignore_label=255, tile_pixels=None):
    """JAX/Pallas equivalent of CrossEntropy2d.forward.

    predict: (N, C, H, W) float (f32 or bf16; bf16 halves HBM traffic)
    target : (N, H, W) int (class indices; ignore_label / negatives skipped)
    weight : optional (C,) per-class rescaling weight
    """
    n, c, h, w = predict.shape
    assert target.shape == (n, h, w)
    hw = h * w

    # Free, contiguous reshapes only — no transpose, no pad of the big tensor.
    logits = predict.reshape(n, c, hw)
    tgt = target.reshape(n, 1, hw).astype(jnp.int32)

    if weight is None:
        weight_arr = jnp.ones((c, 1), jnp.float32)
    else:
        weight_arr = jnp.asarray(weight, jnp.float32).reshape(c, 1)

    # Tile sizing: lane-width multiple, double-buffered logits stream <= ~8 MiB.
    dtype_bytes = jnp.dtype(predict.dtype).itemsize
    if tile_pixels is None:
        budget = 8 * 1024 * 1024
        tp = budget // max(1, 2 * c * dtype_bytes)
        tp = max(128, min(8192, (tp // 128) * 128))
    else:
        tp = int(tile_pixels)
    if hw <= tp:
        tile_pix = hw          # full pixel dim in one tile (always a legal block dim)
    else:
        tile_pix = tp          # multiple of 128; ragged last tile masked in-kernel
    pix_tiles = pl.cdiv(hw, tile_pix)

    kernel = functools.partial(_ce2d_kernel, ignore_label, hw, tile_pix)

    sum_part, den_part = pl.pallas_call(
        kernel,
        out_shape=(jax.ShapeDtypeStruct((n, 1, tile_pix), jnp.float32),
                   jax.ShapeDtypeStruct((n, 1, tile_pix), jnp.float32)),
        grid_spec=pltpu.PrefetchScalarGridSpec(
            num_scalar_prefetch=0,
            grid=(n, pix_tiles),
            in_specs=[
                pl.BlockSpec((c, 1), lambda i, p: (0, 0)),                 # class weights
                pl.BlockSpec((None, c, tile_pix), lambda i, p: (i, 0, p)),  # logits tile
                pl.BlockSpec((None, 1, tile_pix), lambda i, p: (i, 0, p)),  # target tile
            ],
            out_specs=(
                pl.BlockSpec((None, 1, tile_pix), lambda i, p: (i, 0, 0)),  # loss partials
                pl.BlockSpec((None, 1, tile_pix), lambda i, p: (i, 0, 0)),  # weight partials
            ),
        ),
        compiler_params=pltpu.CompilerParams(
            dimension_semantics=("parallel", "arbitrary")),
    )(weight_arr, logits, tgt)

    s = jnp.sum(sum_part)
    d = jnp.sum(den_part)
    if size_average:
        # matches F.cross_entropy mean: sum(w_t * ce) / sum(w_t); 0 if no valid pixels
        return jnp.where(d > 0, s / jnp.maximum(d, 1e-12), 0.0)
    else:
        return jnp.where(d > 0, s, 0.0)


def _reference(predict, target, weight=None, size_average=True, ignore_label=255):
    """Pure-JAX reference for correctness check."""
    n, c, h, w = predict.shape
    logits = jnp.transpose(predict, (0, 2, 3, 1)).reshape(-1, c).astype(jnp.float32)
    t = target.reshape(-1).astype(jnp.int32)
    valid = (t >= 0) & (t != ignore_label)
    safe_t = jnp.where(valid, t, 0)
    logp = jax.nn.log_softmax(logits, axis=-1)
    nll = -jnp.take_along_axis(logp, safe_t[:, None], axis=-1)[:, 0]
    wvec = jnp.ones((c,), jnp.float32) if weight is None else jnp.asarray(weight, jnp.float32)
    w_row = wvec[safe_t]
    v = valid.astype(jnp.float32)
    s = jnp.sum(nll * w_row * v)
    d = jnp.sum(w_row * v)
    if size_average:
        return jnp.where(d > 0, s / jnp.maximum(d, 1e-12), 0.0)
    return jnp.where(d > 0, s, 0.0)


if __name__ == "__main__":
    key = jax.random.PRNGKey(0)
    k1, k2, k3 = jax.random.split(key, 3)

    N, C, H, W = 2, 4, 16, 16
    predict = jax.random.normal(k1, (N, C, H, W), jnp.float32)
    target = jax.random.randint(k2, (N, H, W), 0, C).astype(jnp.int32)
    # sprinkle some ignored pixels (ignore_label = 255)
    ignore_mask = jax.random.bernoulli(k3, 0.2, (N, H, W))
    target = jnp.where(ignore_mask, 255, target)

    # unweighted
    loss = cross_entropy_2d(predict, target, weight=None,
                            size_average=True, ignore_label=255)
    loss = jax.block_until_ready(loss)
    ref = _reference(predict, target, weight=None,
                     size_average=True, ignore_label=255)
    assert jnp.allclose(loss, ref, rtol=1e-5, atol=1e-5), (loss, ref)

    # per-class weighted
    cw = jnp.array([0.5, 1.0, 2.0, 1.5], jnp.float32)
    loss_w = cross_entropy_2d(predict, target, weight=cw,
                              size_average=True, ignore_label=255)
    loss_w = jax.block_until_ready(loss_w)
    ref_w = _reference(predict, target, weight=cw,
                       size_average=True, ignore_label=255)
    assert jnp.allclose(loss_w, ref_w, rtol=1e-5, atol=1e-5), (loss_w, ref_w)

    # sum (size_average=False) path, plus a ragged-tile shape to exercise masking
    H2, W2 = 17, 11
    predict2 = jax.random.normal(k1, (N, C, H2, W2), jnp.float32)
    target2 = jax.random.randint(k2, (N, H2, W2), 0, C).astype(jnp.int32)
    loss_s = cross_entropy_2d(predict2, target2, weight=cw,
                              size_average=False, ignore_label=255, tile_pixels=128)
    loss_s = jax.block_until_ready(loss_s)
    ref_s = _reference(predict2, target2, weight=cw,
                       size_average=False, ignore_label=255)
    assert jnp.allclose(loss_s, ref_s, rtol=1e-5, atol=1e-4), (loss_s, ref_s)

    print("KERNEL_OK")
</pallas_src>

<mosaic_0001>
module attributes {stable_mosaic.version = 11 : i64} {
  func.func @_ce2d_kernel(%arg0: i32, %arg1: i32, %arg2: memref<4x1xf32, #tpu.memory_space<vmem>>, %arg3: memref<1x4x256xf32, #tpu.memory_space<vmem>>, %arg4: memref<1x1x256xi32, #tpu.memory_space<vmem>>, %arg5: memref<1x1x256xf32, #tpu.memory_space<vmem>>, %arg6: memref<1x1x256xf32, #tpu.memory_space<vmem>>) attributes {dimension_semantics = [#tpu.dimension_semantics<parallel>, #tpu.dimension_semantics<arbitrary>], iteration_bounds = array<i64: 2, 1>, scalar_prefetch = 0 : i64, scratch_operands = 0 : i64, tpu.core_type = #tpu.core_type<tc>, window_params = [{pipeline_mode = #tpu.pipeline_mode<synchronous>, transform_indices = @transform_0, window_bounds = array<i64: 4, 1>}, {transform_indices = @transform_1, window_bounds = array<i64: 1, 4, 256>}, {transform_indices = @transform_2, window_bounds = array<i64: 1, 1, 256>}, {transform_indices = @transform_3, window_bounds = array<i64: 1, 1, 256>}, {transform_indices = @transform_4, window_bounds = array<i64: 1, 1, 256>}]} {
    %c0_i32 = arith.constant 0 : i32
    %0 = arith.cmpi eq, %arg1, %c0_i32 : i32
    %1 = arith.extui %0 : i1 to i32
    %c0_i32_0 = arith.constant 0 : i32
    %2 = arith.cmpi ne, %1, %c0_i32_0 : i32
    scf.if %2 {
      %cst_30 = arith.constant 0.000000e+00 : f32
      %62 = vector.broadcast %cst_30 : f32 to vector<1x256xf32>
      %c0_31 = arith.constant 0 : index
      %c0_32 = arith.constant 0 : index
      %c0_33 = arith.constant 0 : index
      %63 = vector.load %arg5[%c0_31, %c0_32, %c0_33] : memref<1x1x256xf32, #tpu.memory_space<vmem>>, vector<1x1x256xf32>
      %64 = vector.shape_cast %63 : vector<1x1x256xf32> to vector<1x256xf32>
      %65 = vector.shape_cast %62 : vector<1x256xf32> to vector<1x1x256xf32>
      tpu.vector_store %arg5[%c0_31, %c0_32, %c0_33], %65 {strides = array<i32>} : memref<1x1x256xf32, #tpu.memory_space<vmem>>, vector<1x1x256xf32>,
      %cst_34 = arith.constant 0.000000e+00 : f32
      %66 = vector.broadcast %cst_34 : f32 to vector<1x256xf32>
      %c0_35 = arith.constant 0 : index
      %c0_36 = arith.constant 0 : index
      %c0_37 = arith.constant 0 : index
      %67 = vector.load %arg6[%c0_35, %c0_36, %c0_37] : memref<1x1x256xf32, #tpu.memory_space<vmem>>, vector<1x1x256xf32>
      %68 = vector.shape_cast %67 : vector<1x1x256xf32> to vector<1x256xf32>
      %69 = vector.shape_cast %66 : vector<1x256xf32> to vector<1x1x256xf32>
      tpu.vector_store %arg6[%c0_35, %c0_36, %c0_37], %69 {strides = array<i32>} : memref<1x1x256xf32, #tpu.memory_space<vmem>>, vector<1x1x256xf32>,
    } else {
    }
    %c0 = arith.constant 0 : index
    %c0_1 = arith.constant 0 : index
    %c0_2 = arith.constant 0 : index
    %3 = vector.load %arg3[%c0, %c0_1, %c0_2] : memref<1x4x256xf32, #tpu.memory_space<vmem>>, vector<1x4x256xf32>
    %4 = vector.shape_cast %3 : vector<1x4x256xf32> to vector<4x256xf32>
    %c0_3 = arith.constant 0 : index
    %c0_4 = arith.constant 0 : index
    %c0_5 = arith.constant 0 : index
    %5 = vector.load %arg4[%c0_3, %c0_4, %c0_5] : memref<1x1x256xi32, #tpu.memory_space<vmem>>, vector<1x1x256xi32>
    %6 = vector.shape_cast %5 : vector<1x1x256xi32> to vector<1x256xi32>
    %c256_i32 = arith.constant 256 : i32
    %7 = arith.muli %arg1, %c256_i32 : i32
    %8 = tpu.iota {dimensions = array<i32: 1>} : vector<1x256xi32>
    %9 = vector.broadcast %7 : i32 to vector<1x256xi32>
    %10 = arith.addi %9, %8 : vector<1x256xi32>
    %c256_i32_6 = arith.constant 256 : i32
    %11 = vector.broadcast %c256_i32_6 : i32 to vector<1x256xi32>
    %12 = arith.cmpi slt, %10, %11 : vector<1x256xi32>
    %c0_i32_7 = arith.constant 0 : i32
    %13 = vector.broadcast %c0_i32_7 : i32 to vector<1x256xi32>
    %14 = arith.cmpi sge, %6, %13 : vector<1x256xi32>
    %c255_i32 = arith.constant 255 : i32
    %15 = vector.broadcast %c255_i32 : i32 to vector<1x256xi32>
    %16 = arith.cmpi ne, %6, %15 : vector<1x256xi32>
    %17 = arith.andi %14, %16 : vector<1x256xi1>
    %18 = arith.andi %12, %17 : vector<1x256xi1>
    %c0_i32_8 = arith.constant 0 : i32
    %19 = vector.broadcast %c0_i32_8 : i32 to vector<1x256xi32>
    %20 = arith.select %18, %6, %19 : vector<1x256xi1>, vector<1x256xi32>
    %21 = tpu.iota {dimensions = array<i32: 0>} : vector<4x256xi32>
    %22 = vector.broadcast %20 : vector<1x256xi32> to vector<4x256xi32>
    %23 = arith.cmpi eq, %21, %22 : vector<4x256xi32>
    %cst = arith.constant dense<0xFF800000> : vector<256xf32>
    %24 = vector.multi_reduction <maximumf>, %4, %cst [0] : vector<4x256xf32> to vector<256xf32>
    %25 = vector.shape_cast %24 : vector<256xf32> to vector<1x256xf32>
    %26 = vector.broadcast %25 : vector<1x256xf32> to vector<4x256xf32>
    %27 = arith.subf %4, %26 : vector<4x256xf32>
    %28 = math.exp %27 : vector<4x256xf32>
    %cst_9 = arith.constant dense<0.000000e+00> : vector<256xf32>
    %29 = vector.multi_reduction <add>, %28, %cst_9 [0] : vector<4x256xf32> to vector<256xf32>
    %30 = vector.shape_cast %29 : vector<256xf32> to vector<1x256xf32>
    %31 = math.log %30 : vector<1x256xf32>
    %32 = arith.addf %25, %31 : vector<1x256xf32>
    %cst_10 = arith.constant 0.000000e+00 : f32
    %33 = vector.broadcast %cst_10 : f32 to vector<4x256xf32>
    %34 = arith.select %23, %4, %33 : vector<4x256xi1>, vector<4x256xf32>
    %cst_11 = arith.constant dense<0.000000e+00> : vector<256xf32>
    %35 = vector.multi_reduction <add>, %34, %cst_11 [0] : vector<4x256xf32> to vector<256xf32>
    %36 = vector.shape_cast %35 : vector<256xf32> to vector<1x256xf32>
    %c0_12 = arith.constant 0 : index
    %c0_13 = arith.constant 0 : index
    %37 = vector.load %arg2[%c0_12, %c0_13] : memref<4x1xf32, #tpu.memory_space<vmem>>, vector<4x1xf32>
    %38 = vector.shape_cast %37 : vector<4x1xf32> to vector<4x1xf32>
    %39 = vector.broadcast %38 : vector<4x1xf32> to vector<4x256xf32>
    %cst_14 = arith.constant 0.000000e+00 : f32
    %40 = vector.broadcast %cst_14 : f32 to vector<4x256xf32>
    %41 = arith.select %23, %39, %40 : vector<4x256xi1>, vector<4x256xf32>
    %cst_15 = arith.constant dense<0.000000e+00> : vector<256xf32>
    %42 = vector.multi_reduction <add>, %41, %cst_15 [0] : vector<4x256xf32> to vector<256xf32>
    %43 = vector.shape_cast %42 : vector<256xf32> to vector<1x256xf32>
    %c0_16 = arith.constant 0 : index
    %c0_17 = arith.constant 0 : index
    %c0_18 = arith.constant 0 : index
    %44 = vector.load %arg5[%c0_16, %c0_17, %c0_18] : memref<1x1x256xf32, #tpu.memory_space<vmem>>, vector<1x1x256xf32>
    %45 = vector.shape_cast %44 : vector<1x1x256xf32> to vector<1x256xf32>
    %46 = arith.subf %32, %36 : vector<1x256xf32>
    %47 = arith.mulf %46, %43 : vector<1x256xf32>
    %cst_19 = arith.constant 0.000000e+00 : f32
    %48 = vector.broadcast %cst_19 : f32 to vector<1x256xf32>
    %49 = arith.select %18, %47, %48 : vector<1x256xi1>, vector<1x256xf32>
    %50 = arith.addf %45, %49 : vector<1x256xf32>
    %c0_20 = arith.constant 0 : index
    %c0_21 = arith.constant 0 : index
    %c0_22 = arith.constant 0 : index
    %51 = vector.load %arg5[%c0_20, %c0_21, %c0_22] : memref<1x1x256xf32, #tpu.memory_space<vmem>>, vector<1x1x256xf32>
    %52 = vector.shape_cast %51 : vector<1x1x256xf32> to vector<1x256xf32>
    %53 = vector.shape_cast %50 : vector<1x256xf32> to vector<1x1x256xf32>
    tpu.vector_store %arg5[%c0_20, %c0_21, %c0_22], %53 {strides = array<i32>} : memref<1x1x256xf32, #tpu.memory_space<vmem>>, vector<1x1x256xf32>,
    %c0_23 = arith.constant 0 : index
    %c0_24 = arith.constant 0 : index
    %c0_25 = arith.constant 0 : index
    %54 = vector.load %arg6[%c0_23, %c0_24, %c0_25] : memref<1x1x256xf32, #tpu.memory_space<vmem>>, vector<1x1x256xf32>
    %55 = vector.shape_cast %54 : vector<1x1x256xf32> to vector<1x256xf32>
    %cst_26 = arith.constant 0.000000e+00 : f32
    %56 = vector.broadcast %cst_26 : f32 to vector<1x256xf32>
    %57 = arith.select %18, %43, %56 : vector<1x256xi1>, vector<1x256xf32>
    %58 = arith.addf %55, %57 : vector<1x256xf32>
    %c0_27 = arith.constant 0 : index
    %c0_28 = arith.constant 0 : index
    %c0_29 = arith.constant 0 : index
    %59 = vector.load %arg6[%c0_27, %c0_28, %c0_29] : memref<1x1x256xf32, #tpu.memory_space<vmem>>, vector<1x1x256xf32>
    %60 = vector.shape_cast %59 : vector<1x1x256xf32> to vector<1x256xf32>
    %61 = vector.shape_cast %58 : vector<1x256xf32> to vector<1x1x256xf32>
    tpu.vector_store %arg6[%c0_27, %c0_28, %c0_29], %61 {strides = array<i32>} : memref<1x1x256xf32, #tpu.memory_space<vmem>>, vector<1x1x256xf32>,
    return
  }
  func.func @transform_0(%arg0: i32, %arg1: i32) -> (i32, i32) {
    %c0_i32 = arith.constant 0 : i32
    %c0_i32_0 = arith.constant 0 : i32
    %c0_i32_1 = arith.constant 0 : i32
    return %c0_i32, %c0_i32_0 : i32, i32
  }
  func.func @transform_1(%arg0: i32, %arg1: i32) -> (i32, i32, i32) {
    %c0_i32 = arith.constant 0 : i32
    %c0_i32_0 = arith.constant 0 : i32
    return %arg0, %c0_i32, %arg1 : i32, i32, i32
  }
  func.func @transform_2(%arg0: i32, %arg1: i32) -> (i32, i32, i32) {
    %c0_i32 = arith.constant 0 : i32
    %c0_i32_0 = arith.constant 0 : i32
    return %arg0, %c0_i32, %arg1 : i32, i32, i32
  }
  func.func @transform_3(%arg0: i32, %arg1: i32) -> (i32, i32, i32) {
    %c0_i32 = arith.constant 0 : i32
    %c0_i32_0 = arith.constant 0 : i32
    %c0_i32_1 = arith.constant 0 : i32
    return %arg0, %c0_i32, %c0_i32_0 : i32, i32, i32
  }
  func.func @transform_4(%arg0: i32, %arg1: i32) -> (i32, i32, i32) {
    %c0_i32 = arith.constant 0 : i32
    %c0_i32_0 = arith.constant 0 : i32
    %c0_i32_1 = arith.constant 0 : i32
    return %arg0, %c0_i32, %c0_i32_0 : i32, i32, i32
  }
}

</mosaic_0001>

<bundles_post_ra>
// kernel: tpu_custom_call.1
= control target key start
LH: loop header
LB: loop body
LE: loop exit
PB: predicated region body
PF: predicated region fallthrough
CT: control target
= control target key end

     0   :  { %10 = vsyncpa [#allocation3], 0  ;;  %s1106_s0 = inlined_call_operand.vmem [shape: f32[4,1], index: 0, kind: input, shape index: {}]   ;;  %s1107_s1 = inlined_call_operand.hbm [shape: f32[2,4,256], index: 1, kind: input, shape index: {}]   ;;  %s1108_s2 = inlined_call_operand.vmem [shape: s32[2,1,256], index: 2, kind: input, shape index: {}]   ;;  %s1109_s3 = inlined_call_operand.hbm [shape: f32[2,1,256], index: 3, kind: output, shape index: {0}]   ;;  %s1110_s4 = inlined_call_operand.hbm [shape: f32[2,1,256], index: 4, kind: output, shape index: {1}]  }
   0x1   :  { %12 = vsyncpa [#allocation3 + $0x1], 0 }
   0x2   :  { %13 = vsyncpa [#allocation4], 0 }
   0x3   :  { %15 = vsyncpa [#allocation4 + $0x1], 0 }
   0x4   :  { %16 = vsyncpa [#allocation7], 0 }
   0x5   :  { %18 = vsyncpa [#allocation7 + $0x1], 0  ;;  %s877_s15 = smov 0   ;;  %s879_s16 = smov 0  }
   0x6   :  { %s881_s17 = smov 0   ;;  %s883_s18 = smov 0  }
   0x7   :  { %s885_s19 = smov 0   ;;  %s887_s20 = smov 0  }
   0x8 LB: > { %s609_s21 = sadd.s32 4294967295, %s848_s20   ;;  %s610_s22 = sadd.s32 4294967294, %s848_s20   ;;  %s848_s20 = sphi %s887_s20, %s24_s20   ;;  %s844_s19 = sphi %s885_s19, %s1129_s19   ;;  %s840_s18 = sphi %s883_s18, %s1128_s18   ;;  %s836_s17 = sphi %s881_s17, %s1127_s17   ;;  %s832_s16 = sphi %s879_s16, %s1126_s16   ;;  %s828_s15 = sphi %s877_s15, %s1125_s15  }
   0x9   : > { %s36_s23 = sadd.s32 1, %s844_s19  ;;  %s66_s24 = sadd.s32 1, %s836_s17 }
   0xa   : > { %p38_p0 = scmp.ge.s32.totalorder %s36_s23, 2  ;;  %p73_p1 = scmp.ne.s32.totalorder %s836_s17, %s832_s16 }
   0xb   : > { %p74_p2 = scmp.eq.s32.totalorder %s848_s20, 0  ;;  %p79_p3 = scmp.ne.s32.totalorder %s832_s16, %s828_s15 }
   0xc   : > { %s1131_s23 = smov (%p38_p0, %s36_s23), 0  ;;  %p80_p5 = scmp.eq.s32.totalorder %s609_s21, 0 }
   0xd   : > { %p918_p4 = por %p74_p2, %p73_p1  ;;  %s61_s26 = ssub.s32 %s844_s19, %s1131_s23 }
   0xe   : > { %p131_p6 = scmp.eq.s32.totalorder %s609_s21, 1  ;;  %p64_p7 = scmp.eq.s32.totalorder %s61_s26, 0 }
   0xf   : > { %p924_p8 = por %p80_p5, %p79_p3  ;;  %p137_p10 = scmp.eq.s32.totalorder %s610_s22, 1 }
  0x10   : > { %p928_p9 = por %p131_p6, %p73_p1  ;;  %p612_p12 = scmp.ge.s32.totalorder %s848_s20, 2 }
  0x11   : > { %s933_s29 = scalar_select %p64_p7, %s836_s17, %s66_s24  }
  0x12   : > { %p935_p11 = por %p137_p10, %p79_p3  ;;  %p645_p13 = scmp.lt.s32.totalorder %s848_s20, 2 }
  0x13   : > { %s186_s5 = sand.u32 1, %s836_s17   ;;  %s627_s7 = sshll.u32 %s844_s19, 3 }
  0x14   : > { %s613_s6 = sshll.u32 %s186_s5, 3  ;;  %s197_s10 = scalar_lea.hbm %s1107_s1, %s627_s7 }
  0x15   : > { %s190_s11 = scalar_lea.vmem [#allocation2], %s613_s6  ;;  %s199_s13 = sshll.u32 %s197_s10, 4  ;;  %s200_s13 = int_to_ptr.hbm [resolvable:$true] %s199_s13 }
  0x16   : > { %s201_s12 = sshll.u32 %s190_s11, 4  ;;  %p635_p0 = pnand %p645_p13, %p918_p4  ;;  %s202_s12 = int_to_ptr.vmem [resolvable:$true] %s201_s12 }
  0x17   : > { %p616_p1 = scmp.ge.s32.totalorder %s848_s20, 1  ;;  %p218_p2 = scmp.lt.s32.totalorder %s848_s20, 3 }
  0x18   : > { %s187_s14 = scalar_lea.sflag [#allocation3], %s186_s5 }
  0x19   : > { %637 = dma.hbm_to_vmem [thread:$0]  (!%p635_p0), %s200_s13, 128, %s202_s12, %s187_s14  }
  0x1a   : > { %p219_p3 = pnand %p616_p1, %p218_p2 }
  0x1b   : > { %s951_s21 = sand.u32 (!%p219_p3), 1, %s832_s16  }
  0x1c   : > { %222 = sbr.rel (%p219_p3) target bundleno = 186 (0xba), region = 32  ;;  %s617_s22 = sshll.u32 (!%p219_p3), %s951_s21, 3 }
  0x1d   : > { %s225_s24 = scalar_lea.sflag (!%p219_p3), [#allocation3], %s951_s21  ;;  %s228_s26 = scalar_lea.vmem (!%p219_p3), [#allocation2], %s617_s22 }
  0x21   : > { %815 = dma.done.wait (%p924_p8), %s225_s24, 128  }
  0x22   : > { %817 = vsyncadd (%p924_p8), %s225_s24, 4294967168  ;;  %v850_v0 = vmov 0   ;;  %v394_v1 = vld [vmem:[%s1106_s0] sm:$0xf]  ;;  %v287_v2 = vld [vmem:[%s228_s26] sm:$0xff]  ;;  %vm324_vm0 = vcmask 1043456   ;;  %v281_v32 = vlaneseq }
  0x23   : > { %697 = vset.pattern.permute.xlu0 %v850_v0  ;;  %319 = vst [vmem:[#allocation1] ss:$2 sm:$0xff] %v287_v2  ;;  %p269_p4 = scmp.lt.s32.totalorder %s840_s18, 1  ;;  %s618_s10 = sshll.u32 %s951_s21, 1  ;;  %vm426_vm9 = vcmask 1040384  }
  0x24   : > { %397 = vperm.xlu0 %697, %v394_v1   ;;  %v313_v41 = vshrl.u32 %v281_v32, 7  ;;  %vm1005_vm8 = vcmp.lt.s32.totalorder %v281_v32, 256  ;;  %s1010_s11 = scalar_lea.vmem [#allocation5], %s618_s10  ;;  %s1016_s12 = scalar_lea.vmem [#allocation6], %s618_s10 }
  0x25   : > { %s270_s27 = scalar_select %p269_p4, %s840_s18, 1 }
  0x26   : > { %s623_s13 = sshll.u32 %s840_s18, 1  ;;  %s477_s5 = sshll.u32 %s1016_s12, 4  ;;  %s478_s5 = int_to_ptr.vmem [resolvable:$true] %s477_s5 }
  0x27   : > { %s620_s6 = sshll.u32 %s270_s27, 1  ;;  %s475_s24 = scalar_lea.hbm %s1110_s4, %s623_s13 }
  0x28   : > { %s275_s9 = scalar_lea.vmem %s1108_s2, %s620_s6  ;;  %s461_s18 = scalar_lea.hbm %s1109_s3, %s623_s13 }
  0x29   : > { %v288_v23 = vld [vmem:[%s275_s9] sm:$0x3]  ;;  %s479_s27 = sshll.u32 %s475_s24, 4  ;;  %s463_s6 = sshll.u32 %s1010_s11, 4  ;;  %s480_s27 = int_to_ptr.hbm [resolvable:$true] %s479_s27  ;;  %s1048_s6 = int_to_ptr.vmem [resolvable:$true] %s463_s6 }
  0x2a   : > { %v321_v3 = vld.sshfl [vmem:[#allocation1 + $0x8] sm:$0xff pattern:$0x75316420]  ;;  %v320_v5 = vld.sshfl [vmem:[#allocation1] sm:$0xff pattern:$0x75316420] }
  0x2b   : > { %v332_v4 = vsel %vm324_vm0, %v321_v3, -inf  ;;  %v325_v7 = vsel %vm324_vm0, %v320_v5, -inf  ;;  %vm298_vm1 = vcmp.ge.s32.totalorder %v288_v23, 0  ;;  %vm299_vm2 = vcmp.ne.s32.totalorder %v288_v23, 255  ;;  %s465_s7 = sshll.u32 %s461_s18, 4  ;;  %s451_s8 = scalar_lea.sflag [#allocation7], %s951_s21  ;;  %s1050_s7 = int_to_ptr.hbm [resolvable:$true] %s465_s7 }
  0x2c   : > { %v333_v6 = vrot.slane %v332_v4, 4  ;;  %v326_v8 = vrot.slane %v325_v7, 4  ;;  %vm300_vm3 = vmand %vm298_vm1, %vm299_vm2  ;;  %v308_v39 = vperm.slane %v288_v23, 0  ;;  %v309_v40 = vperm.slane %v288_v23, 1  ;;  %s748_s9 = sshra.s32 %s480_s27, 4  ;;  %s754_s22 = scalar_lea.hbm %s1110_s4, 4  ;;  %s749_s9 = int_to_ptr.hbm [resolvable:$true] %s748_s9 }
  0x2d   : > { %v301_v25 = vsel %vm300_vm3, 1, %v850_v0  ;;  %s750_s10 = scalar_lea.hbm %s749_s9, 2  ;;  %p755_p8 = scmp.lt.s32.totalorder %s749_s9, %s1110_s4 }
  0x2e   : > { %v334_v9 = vmax.f32 %v332_v4, %v333_v6  ;;  %v327_v10 = vmax.f32 %v325_v7, %v326_v8  ;;  %v302_v26 = vperm.slane %v301_v25, 0  ;;  %v303_v27 = vperm.slane %v301_v25, 1  ;;  %p751_p5 = scmp.ne.s32.totalorder %s749_s9, %s750_s10  ;;  %p756_p10 = scmp.lt.s32.totalorder %s754_s22, %s750_s10 }
  0x30   : > { %v335_v11 = vrot.slane %v334_v9, 2  ;;  %v328_v12 = vrot.slane %v327_v10, 2  ;;  %vm978_vm4 = vcmp.ne.s32.totalorder %v302_v26, 0  ;;  %vm982_vm5 = vcmp.ne.s32.totalorder %v303_v27, 0  ;;  %p752_p6 = pnand %p751_p5, %p928_p9  ;;  %p757_p13 = por %p756_p10, %p755_p8 }
  0x31   : > { %v310_v44 = vsel %vm978_vm4, %v308_v39, 0  ;;  %v311_v45 = vsel %vm982_vm5, %v309_v40, 0 }
  0x32   : > { %v336_v13 = vmax.f32 %v334_v9, %v335_v11  ;;  %v329_v14 = vmax.f32 %v327_v10, %v328_v12  ;;  %v314_v46 = vperm.slane %v310_v44, 0  ;;  %v315_v47 = vperm.slane %v311_v45, 0  ;;  %p753_p7 = pneg %p752_p6 }
  0x34   : > { %v337_v15 = vrot.slane %v336_v13, 1  ;;  %v330_v16 = vrot.slane %v329_v14, 1  ;;  %vm990_vm6 = vcmp.eq.s32.totalorder %v313_v41, %v314_v46  ;;  %vm994_vm7 = vcmp.eq.s32.totalorder %v313_v41, %v315_v47  ;;  %p758_p0 = pnand %p757_p13, %p753_p7 }
  0x36   : > { %v966_v17 = vmax.f32 %v336_v13, %v337_v15  ;;  %v968_v18 = vmax.f32 %v329_v14, %v330_v16  ;;  %v851_v15 = vmov 0.0  }
  0x37   : > { %285 = vst.msk [vmem:[%s1010_s11] sm:$0x3] %vm1005_vm8, %v851_v15 }
  0x38   : > { %v341_v19 = vrot.slane %v966_v17, 4  ;;  %286 = vst.msk [vmem:[%s1016_s12] sm:$0x3] %vm1005_vm8, %v851_v15 }
  0x3a   : > { %v342_v20 = vsel %vm324_vm0, %v968_v18, %v341_v19 }
  0x3b   : > { %v344_v21 = vsub.f32 %v287_v2, %v342_v20 }
  0x3d   : > { %v345_v22 = vmul.f32 1.442695, %v344_v21 }
  0x3f   : > { %698 = vpow2.f32 %v345_v22 }
  0x45   : > { %v699_v24 = vpop.eup %698 }
  0x46   : > { %348 = vst [vmem:[#allocation1] ss:$2 sm:$0xff] %v699_v24 }
  0x4d   : > { %v349_v28 = vld.sshfl [vmem:[#allocation1] sm:$0xff pattern:$0x75316420]  ;;  %v350_v29 = vld.sshfl [vmem:[#allocation1 + $0x8] sm:$0xff pattern:$0x75316420] }
  0x4e   : > { %v353_v30 = vsel %vm324_vm0, %v349_v28, 0.0  ;;  %v360_v31 = vsel %vm324_vm0, %v350_v29, 0.0  ;;  %373 = vst [vmem:[#allocation1] ss:$2 sm:$0xff] %v287_v2 }
  0x4f   : > { %v354_v33 = vrot.slane %v353_v30, 4  ;;  %v361_v34 = vrot.slane %v360_v31, 4 }
  0x51   : > { %v355_v37 = vadd.f32 %v354_v33, %v353_v30  ;;  %v362_v38 = vadd.f32 %v361_v34, %v360_v31 }
  0x53   : > { %v356_v42 = vrot.slane %v355_v37, 2  ;;  %v363_v43 = vrot.slane %v362_v38, 2 }
  0x55   : > { %v357_v48 = vadd.f32 %v356_v42, %v355_v37  ;;  %v364_v49 = vadd.f32 %v363_v43, %v362_v38  ;;  %v374_v54 = vld.sshfl [vmem:[#allocation1] sm:$0xff pattern:$0x75316420]  ;;  %v375_v55 = vld.sshfl [vmem:[#allocation1 + $0x8] sm:$0xff pattern:$0x75316420] }
  0x56   : > { %v378_v56 = vsel %vm990_vm6, %v374_v54, 0.0  ;;  %v379_v59 = vsel %vm994_vm7, %v375_v55, 0.0  ;;  %v435_v43 = vld [vmem:[%s1016_s12] sm:$0x3] }
  0x57   : > { %v358_v52 = vrot.slane %v357_v48, 1  ;;  %v365_v53 = vrot.slane %v364_v49, 1  ;;  %v380_v60 = vsel %vm324_vm0, %v378_v56, 0.0  ;;  %v387_v62 = vsel %vm324_vm0, %v379_v59, 0.0 }
  0x58   : > { %v381_v61 = vrot.slane %v380_v60, 4  ;;  %v388_v63 = vrot.slane %v387_v62, 4 }
  0x59   : > { %v359_v57 = vadd.f32 %v358_v52, %v357_v48  ;;  %v366_v58 = vadd.f32 %v365_v53, %v364_v49  ;;  %v416_v49 = vld [vmem:[%s1010_s11] sm:$0x3] }
  0x5a   : > { %v382_v0 = vadd.f32 %v381_v61, %v380_v60  ;;  %v389_v1 = vadd.f32 %v388_v63, %v387_v62 }
  0x5b   : > { %700 = vlog2.f32 %v359_v57 }
  0x5c   : > { %702 = vlog2.f32 %v366_v58  ;;  %v383_v2 = vrot.slane %v382_v0, 2  ;;  %v390_v3 = vrot.slane %v389_v1, 2 }
  0x5e   : > { %v384_v4 = vadd.f32 %v383_v2, %v382_v0  ;;  %v391_v6 = vadd.f32 %v390_v3, %v389_v1 }
  0x60   : > { %v385_v10 = vrot.slane %v384_v4, 1  ;;  %v392_v12 = vrot.slane %v391_v6, 1 }
  0x61   : > { %v701_v5 = vpop.eup %700 }
  0x62   : > { %v703_v7 = vpop.eup %702  ;;  %v368_v9 = vmul.f32 0.6931472, %v701_v5  ;;  %v386_v14 = vadd.f32 %v385_v10, %v384_v4  ;;  %v393_v19 = vadd.f32 %v392_v12, %v391_v6 }
  0x63   : > { %v370_v11 = vmul.f32 0.6931472, %v703_v7 }
  0x64   : > { %v371_v13 = vadd.f32 %v368_v9, %v968_v18 }
  0x65   : > { %v372_v16 = vadd.f32 %v370_v11, %v966_v17 }
  0x66   : > { %v417_v20 = vsub.f32 %v371_v13, %v386_v14 }
  0x67   : > { %v418_v18 = vsub.f32 %v372_v16, %v393_v19 }
  0x96   : > { %v398_v21 = vpop.permute.xlu0 %397 }
  0x97   : > { %v400_v22 = vsel %vm990_vm6, %v398_v21, 0.0  ;;  %v401_v23 = vsel %vm994_vm7, %v398_v21, 0.0 }
  0x98   : > { %v402_v24 = vsel %vm324_vm0, %v400_v22, 0.0  ;;  %v409_v17 = vsel %vm324_vm0, %v401_v23, 0.0 }
  0x99   : > { %v403_v25 = vrot.slane %v402_v24, 4  ;;  %v410_v26 = vrot.slane %v409_v17, 4 }
  0x9b   : > { %v404_v27 = vadd.f32 %v403_v25, %v402_v24  ;;  %v411_v28 = vadd.f32 %v410_v26, %v409_v17 }
  0x9d   : > { %v405_v29 = vrot.slane %v404_v27, 2  ;;  %v412_v30 = vrot.slane %v411_v28, 2 }
  0x9f   : > { %v406_v31 = vadd.f32 %v405_v29, %v404_v27  ;;  %v413_v32 = vadd.f32 %v412_v30, %v411_v28 }
  0xa1   : > { %v407_v33 = vrot.slane %v406_v31, 1  ;;  %v414_v34 = vrot.slane %v413_v32, 1 }
  0xa3   : > { %v408_v37 = vadd.f32 %v407_v33, %v406_v31  ;;  %v415_v38 = vadd.f32 %v414_v34, %v413_v32 }
  0xa5   : > { %v419_v39 = vmul.f32 %v417_v20, %v408_v37  ;;  %v420_v40 = vmul.f32 %v418_v18, %v415_v38  ;;  %v437_v41 = vsel %vm982_vm5, %v415_v38, 0.0  ;;  %v436_v46 = vsel %vm978_vm4, %v408_v37, 0.0 }
  0xa6   : > { %v440_v42 = vrot.slane %v437_v41, 7 }
  0xa7   : > { %v421_v44 = vsel %vm978_vm4, %v419_v39, 0.0  ;;  %v422_v45 = vsel %vm982_vm5, %v420_v40, 0.0 }
  0xa8   : > { %v425_v47 = vrot.slane %v422_v45, 7  ;;  %v441_v48 = vsel %vm426_vm9, %v436_v46, %v440_v42 }
  0xa9   : > { %v443_v50 = vadd.f32 %v441_v48, %v435_v43 }
  0xaa   : > { %v427_v51 = vsel %vm426_vm9, %v421_v44, %v425_v47 }
  0xab   : > { %v429_v52 = vadd.f32 %v427_v51, %v416_v49  ;;  %444 = vst.msk [vmem:[%s1016_s12] sm:$0x3] %vm1005_vm8, %v443_v50 }
  0xac   : > { %761 = shalt.err (!%p758_p0)
}
  0xad   : > { %631 = dma.vmem_to_hbm [thread:$0]  (%p928_p9), %s478_s5, 32, %s480_s27, %s451_s8   ;;  %434 = vst.msk [vmem:[%s1010_s11] sm:$0x3] %vm1005_vm8, %v429_v52 }
  0xae   : > { %s446_s12 = scalar_lea.sflag [#allocation4], %s951_s21  ;;  %s776_s25 = sshra.s32 %s1050_s7, 4  ;;  %s777_s25 = int_to_ptr.hbm [resolvable:$true] %s776_s25 }
  0xaf   : > { %s778_s18 = scalar_lea.hbm %s777_s25, 2  ;;  %s782_s13 = scalar_lea.hbm %s1109_s3, 4 }
  0xb0   : > { %p779_p1 = scmp.ne.s32.totalorder %s777_s25, %s778_s18  ;;  %p783_p4 = scmp.lt.s32.totalorder %s777_s25, %s1109_s3 }
  0xb1   : > { %p784_p5 = scmp.lt.s32.totalorder %s782_s13, %s778_s18 }
  0xb2   : > { %p780_p2 = pnand %p779_p1, %p928_p9 }
  0xb3   : > { %p785_p6 = por %p784_p5, %p783_p4 }
  0xb4   : > { %p781_p3 = pneg %p780_p2 }
  0xb6   : > { %p786_p7 = pnand %p785_p6, %p781_p3 }
  0xb8   : > { %789 = shalt.err (!%p786_p7)
}
  0xb9   : > { %630 = dma.vmem_to_hbm [thread:$0]  (%p928_p9), %s1048_s6, 32, %s1050_s7, %s446_s12  }
  0xba PF: > { %s491_s21 = sand.u32 1, %s828_s15   ;;  %p639_p8 = pnand %p612_p12, %p935_p11 }
  0xbb   : > { %s492_s11 = scalar_lea.sflag [#allocation4], %s491_s21 }
  0xbc   : > { %p640_p10 = pneg %p639_p8 }
  0xbe   : > { %819 = dma.done.wait (%p640_p10), %s492_s11, 32  }
  0xbf   : > { %821 = vsyncadd (%p640_p10), %s492_s11, 4294967264  ;;  %s502_s5 = scalar_lea.sflag [#allocation7], %s491_s21 }
  0xc0   : > { %823 = dma.done.wait (%p640_p10), %s502_s5, 32  }
  0xc1   : > { %825 = vsyncadd (%p640_p10), %s502_s5, 4294967264  ;;  %s24_s20 = sadd.s32 1, %s848_s20   ;;  %s1125_s15 = smov %s832_s16 }
  0xc2   : > { %p21_p13 = scmp.ge.s32.totalorder %s24_s20, 4   ;;  %s1126_s16 = smov %s836_s17 }
  0xc3   : > { %s1127_s17 = smov %s933_s29  ;;  %s1128_s18 = smov %s844_s19 }
  0xc4   : > { %s1129_s19 = smov %s1131_s23  ;;  %23 = sbr.rel (!%p21_p13) target bundleno = 8 (0x8), region = 101 }
  0xc9   :  { %508 = vsyncpa [#allocation3], 1 }
  0xca   :  { %510 = vsyncpa [#allocation3 + $0x1], 1 }
  0xcb   :  { %511 = vsyncpa [#allocation4], 1 }
  0xcc   :  { %513 = vsyncpa [#allocation4 + $0x1], 1 }
  0xcd   :  { %514 = vsyncpa [#allocation7], 1 }
  0xce   :  { %516 = vsyncpa [#allocation7 + $0x1], 1 }

</bundles_post_ra>
